<compile_context>
chip_gen: v6e
topology: v6e:2x2x1
jax: 0.10.0
libtpu: 0.0.40
codegen_flags: <defaults>
</compile_context>

<pallas_src>
import jax
import jax.numpy as jnp
from jax.experimental import pallas as pl
from jax.experimental.pallas import tpu as pltpu


# ---------------------------------------------------------------------------
# Pre-pass: 1x1-conv projections + PReLU, once per pixel, bf16 outputs.
# ---------------------------------------------------------------------------
def _proj_kernel(x_ref, w1_ref, b1_ref, w2_ref, b2_ref, w3_ref, b3_ref,
                 alphas_ref, e1_ref, e2t_ref, asm_ref):
    a1 = alphas_ref[0]
    a2 = alphas_ref[1]
    a3 = alphas_ref[2]

    def prelu(v, a):
        return jnp.where(v >= 0.0, v, a * v)

    x = x_ref[0].astype(jnp.bfloat16)                                # (C, TP)

    e1 = prelu(jnp.dot(w1_ref[...], x,
                       preferred_element_type=jnp.float32) + b1_ref[...], a1)
    e2 = prelu(jnp.dot(w2_ref[...], x,
                       preferred_element_type=jnp.float32) + b2_ref[...], a2)
    asm = prelu(jnp.dot(w3_ref[...], x,
                        preferred_element_type=jnp.float32) + b3_ref[...], a3)

    e1_ref[0] = e1.astype(jnp.bfloat16)                              # (Cr, TP)
    e2t_ref[0] = e2.T.astype(jnp.bfloat16)                           # (TP, Cr)
    asm_ref[0] = asm.astype(jnp.bfloat16)                            # (C, TP)


# ---------------------------------------------------------------------------
# Main flash-style attention kernel (online softmax over key tiles).
# ---------------------------------------------------------------------------
def _make_attn_kernel(res_scale: float, hw_valid: int, tk: int, needs_mask: bool):
    def kernel(e1_ref, e2t_ref, asm_ref, xq_ref, o_ref, m_scr, l_scr, acc_scr):
        ki = pl.program_id(2)
        nk = pl.num_programs(2)

        @pl.when(ki == 0)
        def _init():
            m_scr[...] = jnp.full_like(m_scr, -jnp.inf)
            l_scr[...] = jnp.zeros_like(l_scr)
            acc_scr[...] = jnp.zeros_like(acc_scr)

        # score[k, q] = sum_c e2[c, k] * e1[c, q]   (bf16 MXU inputs, f32 accum)
        s = jnp.dot(e2t_ref[0], e1_ref[0],
                    preferred_element_type=jnp.float32)              # (TK, TQ)
        if needs_mask:
            kidx = jax.lax.broadcasted_iota(jnp.int32, s.shape, 0) + ki * tk
            s = jnp.where(kidx < hw_valid, s, -jnp.inf)

        # Online softmax over key tiles; stats are (1, TQ) -> fully lane-dense.
        m_prev = m_scr[...]                                          # (1, TQ)
        m_new = jnp.maximum(m_prev, jnp.max(s, axis=0, keepdims=True))
        alpha = jnp.exp(m_prev - m_new)                              # (1, TQ)
        p = jnp.exp(s - m_new)                                       # (TK, TQ)
        l_scr[...] = alpha * l_scr[...] + jnp.sum(p, axis=0, keepdims=True)
        # acc[c, q] += sum_k asm[c, k] * p[k, q]   (NN matmul, no transposes)
        acc_scr[...] = alpha * acc_scr[...] + jnp.dot(
            asm_ref[0], p.astype(jnp.bfloat16),
            preferred_element_type=jnp.float32)                      # (C, TQ)
        m_scr[...] = m_new

        @pl.when(ki == nk - 1)
        def _finalize():
            inv_l = pl.reciprocal(l_scr[...], approx=True)           # (1, TQ)
            o_ref[0] = (acc_scr[...] * inv_l
                        + res_scale * xq_ref[0]).astype(o_ref.dtype)

    return kernel


# ---------------------------------------------------------------------------
# Host-side wrapper.
# ---------------------------------------------------------------------------
def _pick_tile(hw_pad, max_tile):
    """Largest multiple of 128 that divides hw_pad and is <= max_tile."""
    t = min(max_tile, hw_pad)
    t = (t // 128) * 128
    while t > 128:
        if hw_pad % t == 0:
            return t
        t -= 128
    return 128


def nonlocal_attention(x_nchw, params, res_scale=1.0,
                       max_tq=512, max_tk=2048, proj_tile=512):
    """params = (w1, b1, a1, w2, b2, a2, w3, b3, a3); w* are (Cout, Cin),
    b* are (Cout,), a* are scalar PReLU weights (PyTorch 1x1-conv layout)."""
    N, C, H, W = x_nchw.shape
    HW = H * W
    HW_pad = ((HW + 127) // 128) * 128
    needs_mask = HW_pad != HW

    w1, b1, a1, w2, b2, a2, w3, b3, a3 = params
    Cr = w1.shape[0]

    # Channel-major (N, C, HW): free reshape, lane-dense along HW everywhere.
    x = x_nchw.reshape(N, C, HW).astype(jnp.float32)
    if needs_mask:
        x = jnp.pad(x, ((0, 0), (0, 0), (0, HW_pad - HW)))

    w1b = w1.astype(jnp.bfloat16)
    w2b = w2.astype(jnp.bfloat16)
    w3b = w3.astype(jnp.bfloat16)
    b1c = b1.reshape(Cr, 1).astype(jnp.float32)
    b2c = b2.reshape(Cr, 1).astype(jnp.float32)
    b3c = b3.reshape(C, 1).astype(jnp.float32)
    alphas = jnp.stack([jnp.asarray(a1, jnp.float32),
                        jnp.asarray(a2, jnp.float32),
                        jnp.asarray(a3, jnp.float32)])               # (3,) SMEM

    vmem_cap = 48 * 1024 * 1024   # v7x-safe (64 MiB VMEM per TC)

    # ---- pre-pass: projections (once per pixel) --------------------------
    TP = _pick_tile(HW_pad, proj_tile)
    e1, e2t, asm = pl.pallas_call(
        _proj_kernel,
        out_shape=(
            jax.ShapeDtypeStruct((N, Cr, HW_pad), jnp.bfloat16),     # e1
            jax.ShapeDtypeStruct((N, HW_pad, Cr), jnp.bfloat16),     # e2^T
            jax.ShapeDtypeStruct((N, C, HW_pad), jnp.bfloat16),      # assembly
        ),
        grid_spec=pltpu.PrefetchScalarGridSpec(
            num_scalar_prefetch=0,
            grid=(N, HW_pad // TP),
            in_specs=[
                pl.BlockSpec((1, C, TP), lambda n, t: (n, 0, t)),    # x tile
                pl.BlockSpec((Cr, C), lambda n, t: (0, 0)),          # w1
                pl.BlockSpec((Cr, 1), lambda n, t: (0, 0)),          # b1
                pl.BlockSpec((Cr, C), lambda n, t: (0, 0)),          # w2
                pl.BlockSpec((Cr, 1), lambda n, t: (0, 0)),          # b2
                pl.BlockSpec((C, C), lambda n, t: (0, 0)),           # w3
                pl.BlockSpec((C, 1), lambda n, t: (0, 0)),           # b3
                pl.BlockSpec(memory_space=pltpu.MemorySpace.SMEM),   # PReLU alphas
            ],
            out_specs=[
                pl.BlockSpec((1, Cr, TP), lambda n, t: (n, 0, t)),
                pl.BlockSpec((1, TP, Cr), lambda n, t: (n, t, 0)),
                pl.BlockSpec((1, C, TP), lambda n, t: (n, 0, t)),
            ],
        ),
        compiler_params=pltpu.CompilerParams(
            dimension_semantics=("parallel", "parallel"),
            vmem_limit_bytes=vmem_cap,
        ),
    )(x, w1b, b1c, w2b, b2c, w3b, b3c, alphas)

    # ---- main attention kernel -------------------------------------------
    TQ = _pick_tile(HW_pad, max_tq)
    # Keep both v7x TensorCores busy for tiny batches: prefer >= 2 q-tiles.
    while N * (HW_pad // TQ) < 2 and TQ > 128:
        TQ = _pick_tile(HW_pad, TQ - 128)
    TK = _pick_tile(HW_pad, max_tk)
    nq, nk = HW_pad // TQ, HW_pad // TK

    out = pl.pallas_call(
        _make_attn_kernel(float(res_scale), HW, TK, needs_mask),
        out_shape=jax.ShapeDtypeStruct((N, C, HW_pad), jnp.float32),
        grid_spec=pltpu.PrefetchScalarGridSpec(
            num_scalar_prefetch=0,
            grid=(N, nq, nk),
            in_specs=[
                pl.BlockSpec((1, Cr, TQ), lambda n, qi, ki: (n, 0, qi)),  # e1 q-tile
                pl.BlockSpec((1, TK, Cr), lambda n, qi, ki: (n, ki, 0)),  # e2^T k-tile
                pl.BlockSpec((1, C, TK), lambda n, qi, ki: (n, 0, ki)),   # assembly k-tile
                pl.BlockSpec((1, C, TQ), lambda n, qi, ki: (n, 0, qi)),   # x q-tile (residual)
            ],
            out_specs=pl.BlockSpec((1, C, TQ), lambda n, qi, ki: (n, 0, qi)),
            scratch_shapes=[
                pltpu.VMEM((1, TQ), jnp.float32),   # running max
                pltpu.VMEM((1, TQ), jnp.float32),   # running sum
                pltpu.VMEM((C, TQ), jnp.float32),   # output accumulator (lane-dense)
            ],
        ),
        compiler_params=pltpu.CompilerParams(
            dimension_semantics=("parallel", "parallel", "arbitrary"),
            vmem_limit_bytes=vmem_cap,
        ),
    )(e1, e2t, asm, x)

    if needs_mask:
        out = out[:, :, :HW]
    return out.reshape(N, C, H, W)


# ---------------------------------------------------------------------------
# Plain-JAX reference matching the PyTorch forward (NCHW in/out).
# ---------------------------------------------------------------------------
def reference(x_nchw, params, res_scale=1.0):
    N, C, H, W = x_nchw.shape
    HW = H * W
    x = x_nchw.reshape(N, C, HW).astype(jnp.float32)
    w1, b1, a1, w2, b2, a2, w3, b3, a3 = params

    def prelu(v, a):
        return jnp.where(v >= 0, v, a * v)

    def conv1x1(xc, w, b, a):
        return prelu(jnp.einsum("oc,nch->noh", w, xc) + b[None, :, None], a)

    e1 = conv1x1(x, w1, b1, a1)     # (N, Cr, HW)
    e2 = conv1x1(x, w2, b2, a2)     # (N, Cr, HW)
    asm = conv1x1(x, w3, b3, a3)    # (N, C, HW)
    score = jax.nn.softmax(jnp.einsum("nci,ncj->nij", e1, e2), axis=-1)
    out = jnp.einsum("nij,ncj->nci", score, asm) + res_scale * x
    return out.reshape(N, C, H, W)


def init_params(key, channel, reduction):
    """Synthetic params in PyTorch 1x1-conv layout: w (Cout, Cin), b (Cout,), PReLU a."""
    cr = channel // reduction
    keys = jax.random.split(key, 6)
    s = 0.1
    w1 = s * jax.random.normal(keys[0], (cr, channel), jnp.float32)
    b1 = s * jax.random.normal(keys[1], (cr,), jnp.float32)
    w2 = s * jax.random.normal(keys[2], (cr, channel), jnp.float32)
    b2 = s * jax.random.normal(keys[3], (cr,), jnp.float32)
    w3 = s * jax.random.normal(keys[4], (channel, channel), jnp.float32)
    b3 = s * jax.random.normal(keys[5], (channel,), jnp.float32)
    # nn.PReLU() default: single parameter initialized to 0.25
    a1 = jnp.float32(0.25)
    a2 = jnp.float32(0.25)
    a3 = jnp.float32(0.25)
    return (w1, b1, a1, w2, b2, a2, w3, b3, a3)


if __name__ == "__main__":
    # Small shapes consistent with the module: batch=2, channel=8 (reduction=2), 16x16 spatial.
    N, C, H, W = 2, 8, 16, 16
    reduction = 2
    res_scale = 1.0  # module default

    key = jax.random.PRNGKey(0)
    kx, kp = jax.random.split(key)
    x = jax.random.normal(kx, (N, C, H, W), jnp.float32)
    params = init_params(kp, C, reduction)

    y = nonlocal_attention(x, params, res_scale=res_scale)
    y = jax.block_until_ready(y)

    y_ref = reference(x, params, res_scale=res_scale)
    assert y.shape == (N, C, H, W)
    max_err = float(jnp.max(jnp.abs(y - y_ref)))
    # bf16 matmul inputs + approx reciprocal -> slightly looser tolerance than pure f32.
    assert jnp.allclose(y, y_ref, atol=1e-2, rtol=1e-2), f"mismatch vs reference: {max_err}"

    print("KERNEL_OK")
</pallas_src>

<mosaic_0001>
module attributes {stable_mosaic.version = 11 : i64} {
  func.func @_proj_kernel(%arg0: i32, %arg1: i32, %arg2: memref<1x8x256xf32, #tpu.memory_space<vmem>>, %arg3: memref<4x8xbf16, #tpu.memory_space<vmem>>, %arg4: memref<4x1xf32, #tpu.memory_space<vmem>>, %arg5: memref<4x8xbf16, #tpu.memory_space<vmem>>, %arg6: memref<4x1xf32, #tpu.memory_space<vmem>>, %arg7: memref<8x8xbf16, #tpu.memory_space<vmem>>, %arg8: memref<8x1xf32, #tpu.memory_space<vmem>>, %arg9: memref<3xf32, #tpu.memory_space<smem>>, %arg10: memref<1x4x256xbf16, #tpu.memory_space<vmem>>, %arg11: memref<1x256x4xbf16, #tpu.memory_space<vmem>>, %arg12: memref<1x8x256xbf16, #tpu.memory_space<vmem>>) attributes {dimension_semantics = [#tpu.dimension_semantics<parallel>, #tpu.dimension_semantics<parallel>], iteration_bounds = array<i64: 2, 1>, scalar_prefetch = 0 : i64, scratch_operands = 0 : i64, tpu.core_type = #tpu.core_type<tc>, window_params = [{transform_indices = @transform_0, window_bounds = array<i64: 1, 8, 256>}, {pipeline_mode = #tpu.pipeline_mode<synchronous>, transform_indices = @transform_1, window_bounds = array<i64: 4, 8>}, {pipeline_mode = #tpu.pipeline_mode<synchronous>, transform_indices = @transform_2, window_bounds = array<i64: 4, 1>}, {pipeline_mode = #tpu.pipeline_mode<synchronous>, transform_indices = @transform_3, window_bounds = array<i64: 4, 8>}, {pipeline_mode = #tpu.pipeline_mode<synchronous>, transform_indices = @transform_4, window_bounds = array<i64: 4, 1>}, {pipeline_mode = #tpu.pipeline_mode<synchronous>, transform_indices = @transform_5, window_bounds = array<i64: 8, 8>}, {pipeline_mode = #tpu.pipeline_mode<synchronous>, transform_indices = @transform_6, window_bounds = array<i64: 8, 1>}, {transform_indices = @transform_7, window_bounds = array<i64: 3>}, {transform_indices = @transform_8, window_bounds = array<i64: 1, 4, 256>}, {transform_indices = @transform_9, window_bounds = array<i64: 1, 256, 4>}, {transform_indices = @transform_10, window_bounds = array<i64: 1, 8, 256>}]} {
    %c0 = arith.constant 0 : index
    %0 = memref.load %arg9[%c0] : memref<3xf32, #tpu.memory_space<smem>>
    %c1 = arith.constant 1 : index
    %1 = memref.load %arg9[%c1] : memref<3xf32, #tpu.memory_space<smem>>
    %c2 = arith.constant 2 : index
    %2 = memref.load %arg9[%c2] : memref<3xf32, #tpu.memory_space<smem>>
    %c0_0 = arith.constant 0 : index
    %c0_1 = arith.constant 0 : index
    %c0_2 = arith.constant 0 : index
    %3 = vector.load %arg2[%c0_0, %c0_1, %c0_2] : memref<1x8x256xf32, #tpu.memory_space<vmem>>, vector<1x8x256xf32>
    %4 = vector.shape_cast %3 : vector<1x8x256xf32> to vector<8x256xf32>
    %5 = arith.truncf %4 : vector<8x256xf32> to vector<8x256xbf16>
    %c0_3 = arith.constant 0 : index
    %c0_4 = arith.constant 0 : index
    %6 = vector.load %arg3[%c0_3, %c0_4] : memref<4x8xbf16, #tpu.memory_space<vmem>>, vector<4x8xbf16>
    %cst = arith.constant dense<0.000000e+00> : vector<4x256xf32>
    %7 = tpu.matmul %6, %5, %cst {dimension_numbers = #tpu.dot_dimension_numbers<[1], [0], [0], [1], [0, 0, 1, 1], [], []>} : vector<4x8xbf16>, vector<8x256xbf16>, vector<4x256xf32> -> vector<4x256xf32>
    %c0_5 = arith.constant 0 : index
    %c0_6 = arith.constant 0 : index
    %8 = vector.load %arg4[%c0_5, %c0_6] : memref<4x1xf32, #tpu.memory_space<vmem>>, vector<4x1xf32>
    %9 = vector.broadcast %8 : vector<4x1xf32> to vector<4x256xf32>
    %10 = arith.addf %7, %9 : vector<4x256xf32>
    %cst_7 = arith.constant 0.000000e+00 : f32
    %11 = vector.broadcast %cst_7 : f32 to vector<4x256xf32>
    %12 = arith.cmpf oge, %10, %11 : vector<4x256xf32>
    %13 = vector.broadcast %0 : f32 to vector<4x256xf32>
    %14 = arith.mulf %13, %10 : vector<4x256xf32>
    %15 = arith.select %12, %10, %14 : vector<4x256xi1>, vector<4x256xf32>
    %c0_8 = arith.constant 0 : index
    %c0_9 = arith.constant 0 : index
    %16 = vector.load %arg5[%c0_8, %c0_9] : memref<4x8xbf16, #tpu.memory_space<vmem>>, vector<4x8xbf16>
    %cst_10 = arith.constant dense<0.000000e+00> : vector<4x256xf32>
    %17 = tpu.matmul %16, %5, %cst_10 {dimension_numbers = #tpu.dot_dimension_numbers<[1], [0], [0], [1], [0, 0, 1, 1], [], []>} : vector<4x8xbf16>, vector<8x256xbf16>, vector<4x256xf32> -> vector<4x256xf32>
    %c0_11 = arith.constant 0 : index
    %c0_12 = arith.constant 0 : index
    %18 = vector.load %arg6[%c0_11, %c0_12] : memref<4x1xf32, #tpu.memory_space<vmem>>, vector<4x1xf32>
    %19 = vector.broadcast %18 : vector<4x1xf32> to vector<4x256xf32>
    %20 = arith.addf %17, %19 : vector<4x256xf32>
    %cst_13 = arith.constant 0.000000e+00 : f32
    %21 = vector.broadcast %cst_13 : f32 to vector<4x256xf32>
    %22 = arith.cmpf oge, %20, %21 : vector<4x256xf32>
    %23 = vector.broadcast %1 : f32 to vector<4x256xf32>
    %24 = arith.mulf %23, %20 : vector<4x256xf32>
    %25 = arith.select %22, %20, %24 : vector<4x256xi1>, vector<4x256xf32>
    %c0_14 = arith.constant 0 : index
    %c0_15 = arith.constant 0 : index
    %26 = vector.load %arg7[%c0_14, %c0_15] : memref<8x8xbf16, #tpu.memory_space<vmem>>, vector<8x8xbf16>
    %cst_16 = arith.constant dense<0.000000e+00> : vector<8x256xf32>
    %27 = tpu.matmul %26, %5, %cst_16 {dimension_numbers = #tpu.dot_dimension_numbers<[1], [0], [0], [1], [0, 0, 1, 1], [], []>} : vector<8x8xbf16>, vector<8x256xbf16>, vector<8x256xf32> -> vector<8x256xf32>
    %c0_17 = arith.constant 0 : index
    %c0_18 = arith.constant 0 : index
    %28 = vector.load %arg8[%c0_17, %c0_18] : memref<8x1xf32, #tpu.memory_space<vmem>>, vector<8x1xf32>
    %29 = vector.broadcast %28 : vector<8x1xf32> to vector<8x256xf32>
    %30 = arith.addf %27, %29 : vector<8x256xf32>
    %cst_19 = arith.constant 0.000000e+00 : f32
    %31 = vector.broadcast %cst_19 : f32 to vector<8x256xf32>
    %32 = arith.cmpf oge, %30, %31 : vector<8x256xf32>
    %33 = vector.broadcast %2 : f32 to vector<8x256xf32>
    %34 = arith.mulf %33, %30 : vector<8x256xf32>
    %35 = arith.select %32, %30, %34 : vector<8x256xi1>, vector<8x256xf32>
    %36 = arith.truncf %15 : vector<4x256xf32> to vector<4x256xbf16>
    %c0_20 = arith.constant 0 : index
    %c0_21 = arith.constant 0 : index
    %c0_22 = arith.constant 0 : index
    %37 = vector.load %arg10[%c0_20, %c0_21, %c0_22] : memref<1x4x256xbf16, #tpu.memory_space<vmem>>, vector<1x4x256xbf16>
    %38 = vector.shape_cast %37 : vector<1x4x256xbf16> to vector<4x256xbf16>
    %39 = vector.shape_cast %36 : vector<4x256xbf16> to vector<1x4x256xbf16>
    tpu.vector_store %arg10[%c0_20, %c0_21, %c0_22], %39 {strides = array<i32>} : memref<1x4x256xbf16, #tpu.memory_space<vmem>>, vector<1x4x256xbf16>,
    %40 = tpu.transpose %25, [1, 0] : vector<4x256xf32> -> vector<256x4xf32>
    %41 = arith.truncf %40 : vector<256x4xf32> to vector<256x4xbf16>
    %c0_23 = arith.constant 0 : index
    %c0_24 = arith.constant 0 : index
    %c0_25 = arith.constant 0 : index
    %42 = vector.load %arg11[%c0_23, %c0_24, %c0_25] : memref<1x256x4xbf16, #tpu.memory_space<vmem>>, vector<1x256x4xbf16>
    %43 = vector.shape_cast %42 : vector<1x256x4xbf16> to vector<256x4xbf16>
    %44 = vector.shape_cast %41 : vector<256x4xbf16> to vector<1x256x4xbf16>
    tpu.vector_store %arg11[%c0_23, %c0_24, %c0_25], %44 {strides = array<i32>} : memref<1x256x4xbf16, #tpu.memory_space<vmem>>, vector<1x256x4xbf16>,
    %45 = arith.truncf %35 : vector<8x256xf32> to vector<8x256xbf16>
    %c0_26 = arith.constant 0 : index
    %c0_27 = arith.constant 0 : index
    %c0_28 = arith.constant 0 : index
    %46 = vector.load %arg12[%c0_26, %c0_27, %c0_28] : memref<1x8x256xbf16, #tpu.memory_space<vmem>>, vector<1x8x256xbf16>
    %47 = vector.shape_cast %46 : vector<1x8x256xbf16> to vector<8x256xbf16>
    %48 = vector.shape_cast %45 : vector<8x256xbf16> to vector<1x8x256xbf16>
    tpu.vector_store %arg12[%c0_26, %c0_27, %c0_28], %48 {strides = array<i32>} : memref<1x8x256xbf16, #tpu.memory_space<vmem>>, vector<1x8x256xbf16>,
    return
  }
  func.func @transform_0(%arg0: i32, %arg1: i32) -> (i32, i32, i32) {
    %c0_i32 = arith.constant 0 : i32
    %c0_i32_0 = arith.constant 0 : i32
    return %arg0, %c0_i32, %arg1 : i32, i32, i32
  }
  func.func @transform_1(%arg0: i32, %arg1: i32) -> (i32, i32) {
    %c0_i32 = arith.constant 0 : i32
    %c0_i32_0 = arith.constant 0 : i32
    %c0_i32_1 = arith.constant 0 : i32
    return %c0_i32, %c0_i32_0 : i32, i32
  }
  func.func @transform_2(%arg0: i32, %arg1: i32) -> (i32, i32) {
    %c0_i32 = arith.constant 0 : i32
    %c0_i32_0 = arith.constant 0 : i32
    %c0_i32_1 = arith.constant 0 : i32
    return %c0_i32, %c0_i32_0 : i32, i32
  }
  func.func @transform_3(%arg0: i32, %arg1: i32) -> (i32, i32) {
    %c0_i32 = arith.constant 0 : i32
    %c0_i32_0 = arith.constant 0 : i32
    %c0_i32_1 = arith.constant 0 : i32
    return %c0_i32, %c0_i32_0 : i32, i32
  }
  func.func @transform_4(%arg0: i32, %arg1: i32) -> (i32, i32) {
    %c0_i32 = arith.constant 0 : i32
    %c0_i32_0 = arith.constant 0 : i32
    %c0_i32_1 = arith.constant 0 : i32
    return %c0_i32, %c0_i32_0 : i32, i32
  }
  func.func @transform_5(%arg0: i32, %arg1: i32) -> (i32, i32) {
    %c0_i32 = arith.constant 0 : i32
    %c0_i32_0 = arith.constant 0 : i32
    %c0_i32_1 = arith.constant 0 : i32
    return %c0_i32, %c0_i32_0 : i32, i32
  }
  func.func @transform_6(%arg0: i32, %arg1: i32) -> (i32, i32) {
    %c0_i32 = arith.constant 0 : i32
    %c0_i32_0 = arith.constant 0 : i32
    %c0_i32_1 = arith.constant 0 : i32
    return %c0_i32, %c0_i32_0 : i32, i32
  }
  func.func @transform_7(%arg0: i32, %arg1: i32) -> i32 {
    %c0_i32 = arith.constant 0 : i32
    %c0_i32_0 = arith.constant 0 : i32
    return %c0_i32 : i32
  }
  func.func @transform_8(%arg0: i32, %arg1: i32) -> (i32, i32, i32) {
    %c0_i32 = arith.constant 0 : i32
    %c0_i32_0 = arith.constant 0 : i32
    return %arg0, %c0_i32, %arg1 : i32, i32, i32
  }
  func.func @transform_9(%arg0: i32, %arg1: i32) -> (i32, i32, i32) {
    %c0_i32 = arith.constant 0 : i32
    %c0_i32_0 = arith.constant 0 : i32
    return %arg0, %arg1, %c0_i32 : i32, i32, i32
  }
  func.func @transform_10(%arg0: i32, %arg1: i32) -> (i32, i32, i32) {
    %c0_i32 = arith.constant 0 : i32
    %c0_i32_0 = arith.constant 0 : i32
    return %arg0, %c0_i32, %arg1 : i32, i32, i32
  }
}

</mosaic_0001>

<bundles_post_ra>
// kernel: tpu_custom_call.1
= control target key start
LH: loop header
LB: loop body
LE: loop exit
PB: predicated region body
PF: predicated region fallthrough
CT: control target
= control target key end

     0   :  { %s1870_s0 = inlined_call_operand.hbm [shape: f32[2,8,256], index: 0, kind: input, shape index: {}]   ;;  %s1871_s1 = inlined_call_operand.vmem [shape: bf16[4,8], index: 1, kind: input, shape index: {}]   ;;  %s1872_s2 = inlined_call_operand.vmem [shape: f32[4,1], index: 2, kind: input, shape index: {}]   ;;  %s1873_s3 = inlined_call_operand.vmem [shape: bf16[4,8], index: 3, kind: input, shape index: {}]   ;;  %s1874_s4 = inlined_call_operand.vmem [shape: f32[4,1], index: 4, kind: input, shape index: {}]   ;;  %s1875_s5 = inlined_call_operand.vmem [shape: bf16[8,8], index: 5, kind: input, shape index: {}]   ;;  %s1876_s6 = inlined_call_operand.vmem [shape: f32[8,1], index: 6, kind: input, shape index: {}]   ;;  %s1877_s7 = inlined_call_operand.vmem [shape: f32[3], index: 7, kind: input, shape index: {}]   ;;  %s1878_s8 = inlined_call_operand.hbm [shape: bf16[2,4,256], index: 8, kind: output, shape index: {0}]   ;;  %s1879_s9 = inlined_call_operand.vmem [shape: bf16[2,256,4], index: 9, kind: output, shape index: {1}]   ;;  %s1880_s10 = inlined_call_operand.hbm [shape: bf16[2,8,256], index: 10, kind: output, shape index: {2}]  }
   0x1   :  { %1886 = sst [smem:[#allocation18_spill]] %s1877_s7 }
   0x2   :  { %1887 = sst [smem:[#allocation19_spill]] %s1879_s9 }
   0x3   :  { %16 = vsyncpa [#allocation3], 0 }
   0x4   :  { %18 = vsyncpa [#allocation3 + $0x1], 0 }
   0x5   :  { %19 = vsyncpa [#allocation5], 0 }
   0x6   :  { %20 = vsyncpa [#allocation4], 0 }
   0x7   :  { %22 = vsyncpa [#allocation4 + $0x1], 0 }
   0x8   :  { %23 = vsyncpa [#allocation9], 0 }
   0x9   :  { %25 = vsyncpa [#allocation9 + $0x1], 0  ;;  %s1590_s13 = smov 0   ;;  %s1592_s14 = smov 0  }
   0xa   :  { %s1594_s15 = smov 0   ;;  %s1596_s16 = smov 0  }
   0xb   :  { %s1598_s17 = smov 0   ;;  %s1600_s18 = smov 0  }
   0xc LB: > { %1888 = sst [smem:[#allocation14_spill]] %s1508_s13  ;;  %s1104_s19 = sadd.s32 4294967295, %s1528_s18   ;;  %s1528_s18 = sphi %s1600_s18, %s31_s18   ;;  %s1524_s17 = sphi %s1598_s17, %s1908_s17   ;;  %s1520_s16 = sphi %s1596_s16, %s1907_s16   ;;  %s1516_s15 = sphi %s1594_s15, %s1911_s15   ;;  %s1512_s14 = sphi %s1592_s14, %s1910_s14   ;;  %s1508_s13 = sphi %s1590_s13, %s1909_s13  }
   0xd   : > { %1889 = sst [smem:[#allocation15_spill]] %s1524_s17  ;;  %s1105_s20 = sadd.s32 4294967294, %s1528_s18  }
   0xe   : > { %p65_p0 = scmp.ne.s32.totalorder %s1512_s14, %s1508_s13  ;;  %p1624_p1 = scmp.eq.s32.totalorder %s1104_s19, 0 }
   0xf   : > { %p1628_p2 = scmp.eq.s32.totalorder %s1104_s19, 1  ;;  %p244_p3 = scmp.eq.s32.totalorder %s1105_s20, 1 }
  0x10   : > { %p1634_p4 = por %p1624_p1, %p65_p0  ;;  %p1106_p5 = scmp.ge.s32.totalorder %s1528_s18, 1 }
  0x11   : > { %p1639_p6 = por %p244_p3, %p65_p0  ;;  %p307_p7 = scmp.lt.s32.totalorder %s1528_s18, 3 }
  0x12   : > { %s1892_s23 = scalar_select %p1634_p4, 1, 0 }
  0x13   : > { %s1893_s24 = scalar_select %p1639_p6, 1, 0 }
  0x14   : > { %s1895_s7 = sld [smem:[#allocation18_spill]]  ;;  %p1647_p8 = pnand %p1106_p5, %p307_p7 }
  0x15   : > { %1894 = sst [smem:[#allocation16_spill]] %s1893_s24  ;;  %s43_s30 = sadd.s32 1, %s1524_s17 }
  0x16   : > { %p1217_p10 = pneg %p1647_p8  ;;  %s52_s11 = sadd.s32 1, %s1516_s15 }
  0x17   : > { %p45_p12 = scmp.ge.s32.totalorder %s43_s30, 2 }
  0x18   : > { %p1656_p11 = pnand %p1217_p10, %p1624_p1 }
  0x1a   : > { %s338_s27 = sshll.u32 %s1895_s7, 4  ;;  %p1373_p0 = pneg %p1656_p11  ;;  %s339_s27 = int_to_ptr.vmem [resolvable:$true] %s338_s27 }
  0x1b   : > { %s1371_s12 = scalar_lea.vmem %s339_s27, 16  ;;  %p1379_p7 = scmp.lt.s32.totalorder %s339_s27, %s339_s27 }
  0x1c   : > { %p1372_p13 = scmp.ne.s32.totalorder %s339_s27, %s1371_s12  ;;  %p1380_p6 = scmp.lt.s32.totalorder %s1371_s12, %s1371_s12 }
  0x1e   : > { %p1374_p3 = pnand %p1373_p0, %p1372_p13  ;;  %p1381_p9 = por %p1380_p6, %p1379_p7 }
  0x20   : > { %p1375_p5 = pneg %p1374_p3 }
  0x22   : > { %p1382_p4 = pnand %p1381_p9, %p1375_p5 }
  0x24   : > { %1385 = shalt.err (!%p1382_p4)
}
  0x25   : > { %s1530_s19 = smov [#allocation6]   ;;  %s1913_s30 = smov (%p45_p12, %s43_s30), 0 }
  0x26   : > { %1220 = dma.vmem_to_smem (!%p1656_p11), %s339_s27, 16, %s1530_s19, [#allocation5]  }
  0x27   : > { %1898 = sst [smem:[#allocation17_spill]] %s1913_s30  ;;  %p59_p10 = scmp.ne.s32.totalorder %s1516_s15, %s1512_s14 }
  0x28   : > { %p60_p6 = scmp.eq.s32.totalorder %s1528_s18, 0  ;;  %s47_s20 = ssub.s32 %s1524_s17, %s1913_s30 }
  0x29   : > { %p1233_p4 = scmp.lt.s32.totalorder %s1528_s18, 2  ;;  %p50_p9 = scmp.eq.s32.totalorder %s47_s20, 0 }
  0x2a   : > { %p61_p13 = por %p60_p6, %p59_p10  ;;  %p1676_p0 = por %p1628_p2, %p59_p10 }
  0x2b   : > { %s349_s26 = sand.u32 1, %s1516_s15   ;;  %s1170_s7 = sshll.u32 %s1524_s17, 8 }
  0x2c   : > { %s1682_s29 = scalar_select %p50_p9, %s1516_s15, %s52_s11  }
  0x2d   : > { %s1109_s12 = sshll.u32 %s349_s26, 4  ;;  %s361_s24 = scalar_lea.hbm %s1870_s0, %s1170_s7 }
  0x2e   : > { %s353_s13 = scalar_lea.vmem [#allocation2], %s1109_s12  ;;  %p1688_p11 = pnand %p1233_p4, %p61_p13 }
  0x2f   : > { %s363_s9 = sshll.u32 %s353_s13, 4  ;;  %s350_s22 = scalar_lea.sflag [#allocation3], %s349_s26  ;;  %s364_s9 = int_to_ptr.vmem [resolvable:$true] %s363_s9 }
  0x30   : > { %p1388_p2 = pneg %p1688_p11  ;;  %s1399_s30 = scalar_lea.vmem %s364_s9, 256 }
  0x31   : > { %p1400_p12 = scmp.ne.s32.totalorder %s364_s9, %s1399_s30  ;;  %s1531_s11 = smov [#allocation2]  }
  0x32   : > { %s1404_s17 = sshll.u32 %s1531_s11, 4  ;;  %s1405_s17 = int_to_ptr.vmem [resolvable:$false] %s1404_s17 }
  0x33   : > { %p1402_p3 = pnand %p1400_p12, %p1388_p2  ;;  %s1406_s27 = scalar_lea.vmem %s1405_s17, 512 }
  0x34   : > { %p1407_p7 = scmp.lt.s32.totalorder %s364_s9, %s1405_s17  ;;  %p1408_p10 = scmp.lt.s32.totalorder %s1406_s27, %s1399_s30 }
  0x35   : > { %p1403_p5 = pneg %p1402_p3 }
  0x36   : > { %p1409_p6 = por %p1408_p10, %p1407_p7 }
  0x38   : > { %p1410_p9 = pnand %p1409_p6, %p1403_p5 }
  0x3a   : > { %1413 = shalt.err (!%p1410_p9)
}
  0x3b   : > { %1224 = dma.hbm_to_vmem [thread:$0]  (!%p1688_p11), %s361_s24, 256, %s364_s9, %s350_s22  }
  0x3c   : > { %372 = sbr.rel (%p1647_p8) target bundleno = 469 (0x1d5), region = 52  ;;  %s1699_s7 = sand.u32 (!%p1647_p8), 1, %s1512_s14  }
  0x3d   : > { %s1113_s13 = sshll.u32 (!%p1647_p8), %s1699_s7, 4  ;;  %s375_s26 = scalar_lea.sflag (!%p1647_p8), [#allocation3], %s1699_s7 }
  0x3e   : > { %s378_s12 = scalar_lea.vmem (!%p1647_p8), [#allocation2], %s1113_s13  ;;  %p1901_p4 = scmp.ne.s32.totalorder (!%p1647_p8), %s1892_s23, 0 }
  0x41   : > { %1491 = dma.done.wait (%p1901_p4), %s375_s26, 256  }
  0x42   : > { %1493 = vsyncadd (%p1901_p4), %s375_s26, 4294967040 }
  0x43   : > { %1495 = dma.done.wait (%p1624_p1), [#allocation5], 16  }
  0x44   : > { %1497 = vsyncadd (%p1624_p1), [#allocation5], 4294967280 }
  0x45   : > { %387 = sfence }
  0x46   : > { %v452_v0 = vld [vmem:[%s378_s12 + $0x8] sm:$0xff]  ;;  %vm466_vm0 = vcmask 1043456   ;;  %v451_v1 = vld [vmem:[%s378_s12] sm:$0xff]  ;;  %v1532_v4 = vmov 0   ;;  %vm462_vm1 = vcmask 64512   ;;  %s448_s13 = sld [smem:[#allocation6]] }
  0x47   : > { %v454_v2 = vpack.c.bf16 %v452_v0, %v452_v0  ;;  %v453_v3 = vpack.c.bf16 %v451_v1, %v451_v1  ;;  %505 = vmatprep.mubr.bf16.mxu0 %v1532_v4  ;;  %563 = vmatprep.mubr.bf16.mxu1 %v1532_v4  ;;  %v522_v5 = vld [vmem:[%s1874_s4] sm:$0xf]  ;;  %s1119_s26 = sld [smem:[#allocation6 + $0x1]]  ;;  %s1115_s9 = sshll.u32 %s1699_s7, 2 }
  0x48   : > { %1287 = vset.pattern.permute.xlu0 %v1532_v4  ;;  %1288 = vset.pattern.permute.xlu1 %v1532_v4  ;;  %v580_v7 = vld [vmem:[%s1876_s6] sm:$0xff]  ;;  %s1733_s12 = sld [smem:[#allocation6 + $0x2]]  ;;  %s415_s17 = scalar_lea.vmem [#allocation7], %s1115_s9 }
  0x49   : > { %1121 = vmatprep.subr.msk.bf16.mxu0 %vm466_vm0, %v454_v2  ;;  %1123 = vmatprep.subr.msk.bf16.mxu1 %vm466_vm0, %v454_v2  ;;  %v468_v6 = vsel %vm466_vm0, %v453_v3, 0  ;;  %v455_v8 = vld [vmem:[%s1871_s1] sm:$0x3]  ;;  %s1116_s21 = sshll.u32 %s1699_s7, 3  ;;  %s1205_s24 = sshll.u32 %s1520_s16, 6 }
  0x4a   : > { %488 = vmatpush1.bf16.msra.mxu0 %v468_v6  ;;  %546 = vmatpush1.bf16.msra.mxu1 %v468_v6  ;;  %v521_v9 = vld [vmem:[%s1873_s3] sm:$0x3]  ;;  %s1738_s23 = scalar_lea.vmem [#allocation8], %s1116_s21  ;;  %s916_s28 = sshll.u32 %s415_s17, 4  ;;  %s917_s28 = int_to_ptr.vmem [resolvable:$true] %s916_s28 }
  0x4b   : > { %525 = vperm.xlu0 %1287, %v522_v5   ;;  %1125 = vmatprep.subr.msk.bf16.mxu0 %vm466_vm0, %v454_v2  ;;  %v456_v10 = vld [vmem:[%s1872_s2] sm:$0xf]  ;;  %s914_s20 = scalar_lea.hbm %s1878_s8, %s1205_s24  ;;  %s886_s22 = scalar_lea.sflag [#allocation4], %s1699_s7 }
  0x4c   : > { %583 = vperm.xlu1 %1288, %v580_v7   ;;  %v579_v11 = vld [vmem:[%s1875_s5] sm:$0xf]  ;;  %v516_v17 = vstv %s448_s13  ;;  %s1414_s11 = scalar_lea.vmem %s917_s28, 64  ;;  %s1533_s27 = smov [#allocation7]  }
  0x4d   : > { %1122 = vmatmul.mubr.msk.bf16.vlgmr.msra.gmra.mxu0 %vm462_vm1, %v455_v8  ;;  %1124 = vmatmul.mubr.msk.bf16.vlgmr.msra.gmra.mxu1 %vm462_vm1, %v521_v9  ;;  %v574_v19 = vstv %s1119_s26  ;;  %p1415_p1 = scmp.ne.s32.totalorder %s917_s28, %s1414_s11  ;;  %s1418_s13 = sshll.u32 %s1533_s27, 4  ;;  %s1419_s13 = int_to_ptr.vmem [resolvable:$false] %s1418_s13 }
  0x4e   : > { %604 = vmatpush1.bf16.msra.mxu0 %v468_v6  ;;  %621 = vmatprep.mubr.bf16.mxu0 %v1532_v4  ;;  %v632_v33 = vstv %s1733_s12  ;;  %s1420_s26 = scalar_lea.vmem %s1419_s13, 128  ;;  %p1421_p11 = scmp.lt.s32.totalorder %s917_s28, %s1419_s13 }
  0x4f   : > { %459 = vperm.xlu0 %1287, %v456_v10   ;;  %p1416_p8 = pnand %p1415_p1, %p1676_p0  ;;  %p1422_p2 = scmp.lt.s32.totalorder %s1420_s26, %s1414_s11 }
  0x51   : > { %p1417_p13 = pneg %p1416_p8  ;;  %p1423_p12 = por %p1422_p2, %p1421_p11 }
  0x53   : > { %p1424_p3 = pnand %p1423_p12, %p1417_p13 }
  0x55   : > { %1126 = vmatmul.mubr.msk.bf16.vlgmr.msra.gmra.mxu0 %vm462_vm1, %v579_v11 }
  0xc6   : > { %v526_v12 = vpop.permute.xlu0 %525 }
  0xc7   : > { %v584_v28 = vpop.permute.xlu1 %583 }
  0xca   : > { %v460_v13 = vpop.permute.xlu0 %459 }
 0x10d   : > { %v507_v14 = vpop.f32.mrf.mxu0  ;;  %v565_v15 = vpop.f32.mrf.mxu1 }
 0x10e   : > { %v508_v16 = vadd.f32 %v507_v14, %v460_v13  ;;  %v566_v18 = vadd.f32 %v565_v15, %v526_v12 }
 0x10f   : > { %v509_v20 = vpop.f32.mrf.mxu0  ;;  %v567_v21 = vpop.f32.mrf.mxu1 }
 0x110   : > { %v517_v22 = vmul.f32 %v516_v17, %v508_v16  ;;  %v575_v23 = vmul.f32 %v574_v19, %v566_v18  ;;  %v510_v24 = vadd.f32 %v509_v20, %v460_v13  ;;  %v568_v25 = vadd.f32 %v567_v21, %v526_v12 }
 0x111   : > { %v569_v26 = vpop.f32.mrf.mxu1  ;;  %v511_v27 = vpop.f32.mrf.mxu0  ;;  %vm514_vm2 = vcmp.ge.f32.partialorder %v508_v16, 0.0  ;;  %vm572_vm3 = vcmp.ge.f32.partialorder %v566_v18, 0.0 }
 0x112   : > { %vm515_vm4 = vcmp.ge.f32.partialorder %v510_v24, 0.0  ;;  %v518_v29 = vmul.f32 %v516_v17, %v510_v24  ;;  %vm573_vm5 = vcmp.ge.f32.partialorder %v568_v25, 0.0  ;;  %v576_v30 = vmul.f32 %v574_v19, %v568_v25 }
 0x113   : > { %v570_v31 = vpop.f32.mrf.mxu1  ;;  %v512_v32 = vpop.f32.mrf.mxu0  ;;  %v519_v34 = vsel %vm514_vm2, %v508_v16, %v517_v22  ;;  %v577_v36 = vsel %vm572_vm3, %v566_v18, %v575_v23 }
 0x114   : > { %v520_v35 = vsel %vm515_vm4, %v510_v24, %v518_v29  ;;  %v578_v37 = vsel %vm573_vm5, %v568_v25, %v576_v30 }
 0x115   : > { %v623_v38 = vpop.f32.mrf.mxu0  ;;  %v1289_v39 = vpack.i.bf16 %v578_v37, %v577_v36  ;;  %v1127_v41 = vpack.c.bf16 %v520_v35, %v519_v34 }
 0x116   : > { %v624_v40 = vadd.f32 %v623_v38, %v584_v28 }
 0x117   : > { %v625_v42 = vpop.f32.mrf.mxu0  ;;  %1290 = vxpose.xlu1.b32.start.end [1/1] (short) %v1289_v39, 128  ;;  %1128 = vst.sshfl [vmem:[%s415_s17] sm:$0x33 pattern:$0x76325410] %v1127_v41 }
 0x118   : > { %vm630_vm6 = vcmp.ge.f32.partialorder %v624_v40, 0.0  ;;  %v626_v43 = vadd.f32 %v625_v42, %v584_v28  ;;  %v633_v44 = vmul.f32 %v632_v33, %v624_v40 }
 0x119   : > { %v627_v45 = vpop.f32.mrf.mxu0 }
 0x11a   : > { %vm631_vm7 = vcmp.ge.f32.partialorder %v626_v43, 0.0  ;;  %v634_v46 = vmul.f32 %v632_v33, %v626_v43  ;;  %v635_v47 = vsel %vm630_vm6, %v624_v40, %v633_v44 }
 0x11b   : > { %v628_v48 = vpop.f32.mrf.mxu0 }
 0x11c   : > { %v636_v49 = vsel %vm631_vm7, %v626_v43, %v634_v46 }
 0x11d   : > { %v1204_v50 = vpack.c.bf16 %v636_v49, %v635_v47 }
 0x11f   : > { %884 = vst [vmem:[%s1738_s23] sm:$0xff] %v1204_v50 }
 0x120   : > { %1427 = shalt.err (!%p1424_p3)
}
 0x121   : > { %s1428_s12 = scalar_lea.hbm %s914_s20, 64  ;;  %s1432_s21 = scalar_lea.hbm %s1878_s8, 128 }
 0x122   : > { %p1429_p5 = scmp.ne.s32.totalorder %s914_s20, %s1428_s12  ;;  %p1433_p6 = scmp.lt.s32.totalorder %s914_s20, %s1878_s8 }
 0x123   : > { %p1434_p9 = scmp.lt.s32.totalorder %s1432_s21, %s1428_s12 }
 0x124   : > { %p1430_p7 = pnand %p1429_p5, %p1676_p0 }
 0x125   : > { %p1435_p4 = por %p1434_p9, %p1433_p6 }
 0x126   : > { %p1431_p10 = pneg %p1430_p7 }
 0x128   : > { %p1436_p1 = pnand %p1435_p4, %p1431_p10 }
 0x12a   : > { %1439 = shalt.err (!%p1436_p1)
}
 0x12b   : > { %1213 = dma.vmem_to_hbm [thread:$0]  (%p1676_p0), %s917_s28, 64, %s914_s20, %s886_s22  }
 0x12c   : > { %s1206_s19 = sshll.u32 %s1520_s16, 7  ;;  %s936_s11 = sshll.u32 %s1738_s23, 4  ;;  %s937_s11 = int_to_ptr.vmem [resolvable:$true] %s936_s11 }
 0x12d   : > { %s934_s26 = scalar_lea.hbm %s1880_s10, %s1206_s19  ;;  %s900_s9 = scalar_lea.sflag [#allocation9], %s1699_s7 }
 0x12e   : > { %s1440_s17 = scalar_lea.vmem %s937_s11, 128  ;;  %s1534_s12 = smov [#allocation8]  }
 0x12f   : > { %p1441_p8 = scmp.ne.s32.totalorder %s937_s11, %s1440_s17  ;;  %s1444_s21 = sshll.u32 %s1534_s12, 4  ;;  %s1445_s21 = int_to_ptr.vmem [resolvable:$false] %s1444_s21 }
 0x130   : > { %s1446_s24 = scalar_lea.vmem %s1445_s21, 256  ;;  %p1447_p2 = scmp.lt.s32.totalorder %s937_s11, %s1445_s21 }
 0x131   : > { %p1442_p13 = pnand %p1441_p8, %p1676_p0  ;;  %p1448_p12 = scmp.lt.s32.totalorder %s1446_s24, %s1440_s17 }
 0x133   : > { %p1443_p11 = pneg %p1442_p13  ;;  %p1449_p3 = por %p1448_p12, %p1447_p2 }
 0x135   : > { %p1450_p5 = pnand %p1449_p3, %p1443_p11 }
 0x137   : > { %1453 = shalt.err (!%p1450_p5)
}
 0x138   : > { %s1454_s23 = scalar_lea.hbm %s934_s26, 128  ;;  %s1458_s20 = scalar_lea.hbm %s1880_s10, 256 }
 0x139   : > { %p1455_p7 = scmp.ne.s32.totalorder %s934_s26, %s1454_s23  ;;  %p1459_p9 = scmp.lt.s32.totalorder %s934_s26, %s1880_s10 }
 0x13a   : > { %p1460_p4 = scmp.lt.s32.totalorder %s1458_s20, %s1454_s23 }
 0x13b   : > { %p1456_p10 = pnand %p1455_p7, %p1676_p0 }
 0x13c   : > { %p1461_p1 = por %p1460_p4, %p1459_p9 }
 0x13d   : > { %p1457_p6 = pneg %p1456_p10 }
 0x13f   : > { %p1462_p8 = pnand %p1461_p1, %p1457_p6 }
 0x141   : > { %1465 = shalt.err (!%p1462_p8)
}
 0x142   : > { %1214 = dma.vmem_to_hbm [thread:$0]  (%p1676_p0), %s937_s11, 128, %s934_s26, %s900_s9   ;;  %vm843_vm8 = vcmask 27648  }
 0x143   : > { %p437_p13 = scmp.lt.s32.totalorder %s1520_s16, 1  ;;  %s1902_s17 = sld [smem:[#allocation19_spill]] }
 0x145   : > { %s1915_s16 = smov (!%p437_p13, %s1520_s16), 1 }
 0x146   : > { %s1171_s19 = sshll.u32 %s1915_s16, 7 }
 0x149   : > { %s1781_s12 = scalar_lea.vmem %s1902_s17, %s1171_s19 }
 0x193   : > { %v1291_v51 = vpop.trf.xlu1 }
 0x194   : > { %v1295_v52 = vunpack.i.h.bf16 %v1291_v51  ;;  %v1292_v53 = vunpack.i.l.bf16 %v1291_v51 }
 0x196   : > { %v1188_v54 = vpack.c.bf16 %v1295_v52, %v1295_v52  ;;  %v1172_v55 = vpack.c.bf16 %v1292_v53, %v1292_v53 }
 0x197   : > { %v1296_v56 = vpop.trf.xlu1 }
 0x198   : > { %844 = vst.msk [vmem:[%s1781_s12] sm:$0xf] %vm843_vm8, %v1172_v55  ;;  %860 = vst.msk [vmem:[%s1781_s12 + $0x40] sm:$0xf] %vm843_vm8, %v1188_v54  ;;  %v1300_v57 = vunpack.i.h.bf16 %v1296_v56  ;;  %v1297_v58 = vunpack.i.l.bf16 %v1296_v56 }
 0x19a   : > { %v1189_v59 = vpack.c.bf16 %v1300_v57, %v1300_v57  ;;  %v1173_v60 = vpack.c.bf16 %v1297_v58, %v1297_v58 }
 0x19b   : > { %v1301_v61 = vpop.trf.xlu1 }
 0x19c   : > { %845 = vst.msk [vmem:[%s1781_s12 + $0x4] sm:$0xf] %vm843_vm8, %v1173_v60  ;;  %861 = vst.msk [vmem:[%s1781_s12 + $0x44] sm:$0xf] %vm843_vm8, %v1189_v59  ;;  %v1305_v62 = vunpack.i.h.bf16 %v1301_v61  ;;  %v1302_v63 = vunpack.i.l.bf16 %v1301_v61 }
 0x19e   : > { %v1190_v0 = vpack.c.bf16 %v1305_v62, %v1305_v62  ;;  %v1174_v1 = vpack.c.bf16 %v1302_v63, %v1302_v63 }
 0x19f   : > { %v1306_v2 = vpop.trf.xlu1 }
 0x1a0   : > { %846 = vst.msk [vmem:[%s1781_s12 + $0x8] sm:$0xf] %vm843_vm8, %v1174_v1  ;;  %862 = vst.msk [vmem:[%s1781_s12 + $0x48] sm:$0xf] %vm843_vm8, %v1190_v0  ;;  %v1310_v3 = vunpack.i.h.bf16 %v1306_v2  ;;  %v1307_v4 = vunpack.i.l.bf16 %v1306_v2 }
 0x1a2   : > { %v1191_v5 = vpack.c.bf16 %v1310_v3, %v1310_v3  ;;  %v1175_v6 = vpack.c.bf16 %v1307_v4, %v1307_v4 }
 0x1a3   : > { %v1311_v7 = vpop.trf.xlu1 }
 0x1a4   : > { %847 = vst.msk [vmem:[%s1781_s12 + $0xc] sm:$0xf] %vm843_vm8, %v1175_v6  ;;  %863 = vst.msk [vmem:[%s1781_s12 + $0x4c] sm:$0xf] %vm843_vm8, %v1191_v5  ;;  %v1315_v8 = vunpack.i.h.bf16 %v1311_v7  ;;  %v1312_v9 = vunpack.i.l.bf16 %v1311_v7 }
 0x1a6   : > { %v1192_v10 = vpack.c.bf16 %v1315_v8, %v1315_v8  ;;  %v1176_v11 = vpack.c.bf16 %v1312_v9, %v1312_v9 }
 0x1a7   : > { %v1316_v12 = vpop.trf.xlu1 }
 0x1a8   : > { %848 = vst.msk [vmem:[%s1781_s12 + $0x10] sm:$0xf] %vm843_vm8, %v1176_v11  ;;  %864 = vst.msk [vmem:[%s1781_s12 + $0x50] sm:$0xf] %vm843_vm8, %v1192_v10  ;;  %v1320_v13 = vunpack.i.h.bf16 %v1316_v12  ;;  %v1317_v14 = vunpack.i.l.bf16 %v1316_v12 }
 0x1aa   : > { %v1193_v15 = vpack.c.bf16 %v1320_v13, %v1320_v13  ;;  %v1177_v16 = vpack.c.bf16 %v1317_v14, %v1317_v14 }
 0x1ab   : > { %v1321_v17 = vpop.trf.xlu1 }
 0x1ac   : > { %849 = vst.msk [vmem:[%s1781_s12 + $0x14] sm:$0xf] %vm843_vm8, %v1177_v16  ;;  %865 = vst.msk [vmem:[%s1781_s12 + $0x54] sm:$0xf] %vm843_vm8, %v1193_v15  ;;  %v1325_v18 = vunpack.i.h.bf16 %v1321_v17  ;;  %v1322_v19 = vunpack.i.l.bf16 %v1321_v17 }
 0x1ae   : > { %v1194_v20 = vpack.c.bf16 %v1325_v18, %v1325_v18  ;;  %v1178_v21 = vpack.c.bf16 %v1322_v19, %v1322_v19 }
 0x1af   : > { %v1326_v22 = vpop.trf.xlu1 }
 0x1b0   : > { %850 = vst.msk [vmem:[%s1781_s12 + $0x18] sm:$0xf] %vm843_vm8, %v1178_v21  ;;  %866 = vst.msk [vmem:[%s1781_s12 + $0x58] sm:$0xf] %vm843_vm8, %v1194_v20  ;;  %v1330_v23 = vunpack.i.h.bf16 %v1326_v22  ;;  %v1327_v24 = vunpack.i.l.bf16 %v1326_v22 }
 0x1b2   : > { %v1195_v25 = vpack.c.bf16 %v1330_v23, %v1330_v23  ;;  %v1179_v26 = vpack.c.bf16 %v1327_v24, %v1327_v24 }
 0x1b3   : > { %v1331_v27 = vpop.trf.xlu1 }
 0x1b4   : > { %851 = vst.msk [vmem:[%s1781_s12 + $0x1c] sm:$0xf] %vm843_vm8, %v1179_v26  ;;  %867 = vst.msk [vmem:[%s1781_s12 + $0x5c] sm:$0xf] %vm843_vm8, %v1195_v25  ;;  %v1335_v28 = vunpack.i.h.bf16 %v1331_v27  ;;  %v1332_v29 = vunpack.i.l.bf16 %v1331_v27 }
 0x1b6   : > { %v1196_v30 = vpack.c.bf16 %v1335_v28, %v1335_v28  ;;  %v1180_v31 = vpack.c.bf16 %v1332_v29, %v1332_v29 }
 0x1b7   : > { %v1336_v32 = vpop.trf.xlu1 }
 0x1b8   : > { %852 = vst.msk [vmem:[%s1781_s12 + $0x20] sm:$0xf] %vm843_vm8, %v1180_v31  ;;  %868 = vst.msk [vmem:[%s1781_s12 + $0x60] sm:$0xf] %vm843_vm8, %v1196_v30  ;;  %v1340_v33 = vunpack.i.h.bf16 %v1336_v32  ;;  %v1337_v34 = vunpack.i.l.bf16 %v1336_v32 }
 0x1ba   : > { %v1197_v35 = vpack.c.bf16 %v1340_v33, %v1340_v33  ;;  %v1181_v36 = vpack.c.bf16 %v1337_v34, %v1337_v34 }
 0x1bb   : > { %v1341_v37 = vpop.trf.xlu1 }
 0x1bc   : > { %853 = vst.msk [vmem:[%s1781_s12 + $0x24] sm:$0xf] %vm843_vm8, %v1181_v36  ;;  %869 = vst.msk [vmem:[%s1781_s12 + $0x64] sm:$0xf] %vm843_vm8, %v1197_v35  ;;  %v1345_v38 = vunpack.i.h.bf16 %v1341_v37  ;;  %v1342_v39 = vunpack.i.l.bf16 %v1341_v37 }
 0x1be   : > { %v1198_v40 = vpack.c.bf16 %v1345_v38, %v1345_v38  ;;  %v1182_v41 = vpack.c.bf16 %v1342_v39, %v1342_v39 }
 0x1bf   : > { %v1346_v42 = vpop.trf.xlu1 }
 0x1c0   : > { %854 = vst.msk [vmem:[%s1781_s12 + $0x28] sm:$0xf] %vm843_vm8, %v1182_v41  ;;  %870 = vst.msk [vmem:[%s1781_s12 + $0x68] sm:$0xf] %vm843_vm8, %v1198_v40  ;;  %v1350_v43 = vunpack.i.h.bf16 %v1346_v42  ;;  %v1347_v44 = vunpack.i.l.bf16 %v1346_v42 }
 0x1c2   : > { %v1199_v45 = vpack.c.bf16 %v1350_v43, %v1350_v43  ;;  %v1183_v46 = vpack.c.bf16 %v1347_v44, %v1347_v44 }
 0x1c3   : > { %v1351_v47 = vpop.trf.xlu1 }
 0x1c4   : > { %855 = vst.msk [vmem:[%s1781_s12 + $0x2c] sm:$0xf] %vm843_vm8, %v1183_v46  ;;  %871 = vst.msk [vmem:[%s1781_s12 + $0x6c] sm:$0xf] %vm843_vm8, %v1199_v45  ;;  %v1355_v48 = vunpack.i.h.bf16 %v1351_v47  ;;  %v1352_v49 = vunpack.i.l.bf16 %v1351_v47 }
 0x1c6   : > { %v1200_v50 = vpack.c.bf16 %v1355_v48, %v1355_v48  ;;  %v1184_v51 = vpack.c.bf16 %v1352_v49, %v1352_v49 }
 0x1c7   : > { %v1356_v52 = vpop.trf.xlu1 }
 0x1c8   : > { %856 = vst.msk [vmem:[%s1781_s12 + $0x30] sm:$0xf] %vm843_vm8, %v1184_v51  ;;  %872 = vst.msk [vmem:[%s1781_s12 + $0x70] sm:$0xf] %vm843_vm8, %v1200_v50  ;;  %v1360_v53 = vunpack.i.h.bf16 %v1356_v52  ;;  %v1357_v54 = vunpack.i.l.bf16 %v1356_v52 }
 0x1ca   : > { %v1201_v55 = vpack.c.bf16 %v1360_v53, %v1360_v53  ;;  %v1185_v56 = vpack.c.bf16 %v1357_v54, %v1357_v54 }
 0x1cb   : > { %v1361_v57 = vpop.trf.xlu1 }
 0x1cc   : > { %857 = vst.msk [vmem:[%s1781_s12 + $0x34] sm:$0xf] %vm843_vm8, %v1185_v56  ;;  %873 = vst.msk [vmem:[%s1781_s12 + $0x74] sm:$0xf] %vm843_vm8, %v1201_v55  ;;  %v1365_v58 = vunpack.i.h.bf16 %v1361_v57  ;;  %v1362_v59 = vunpack.i.l.bf16 %v1361_v57 }
 0x1ce   : > { %v1202_v60 = vpack.c.bf16 %v1365_v58, %v1365_v58  ;;  %v1186_v61 = vpack.c.bf16 %v1362_v59, %v1362_v59 }
 0x1cf   : > { %v1366_v62 = vpop.trf.xlu1 }
 0x1d0   : > { %858 = vst.msk [vmem:[%s1781_s12 + $0x38] sm:$0xf] %vm843_vm8, %v1186_v61  ;;  %874 = vst.msk [vmem:[%s1781_s12 + $0x78] sm:$0xf] %vm843_vm8, %v1202_v60  ;;  %v1370_v63 = vunpack.i.h.bf16 %v1366_v62  ;;  %v1367_v0 = vunpack.i.l.bf16 %v1366_v62 }
 0x1d2   : > { %v1203_v1 = vpack.c.bf16 %v1370_v63, %v1370_v63  ;;  %v1187_v2 = vpack.c.bf16 %v1367_v0, %v1367_v0 }
 0x1d4   : > { %859 = vst.msk [vmem:[%s1781_s12 + $0x3c] sm:$0xf] %vm843_vm8, %v1187_v2  ;;  %875 = vst.msk [vmem:[%s1781_s12 + $0x7c] sm:$0xf] %vm843_vm8, %v1203_v1 }
 0x1d5 PF: > { %s1903_s16 = sld [smem:[#allocation14_spill]]  ;;  %p1906_p11 = scmp.ge.s32.totalorder %s1528_s18, 2 }
 0x1d6   : > { %s1904_s25 = sld [smem:[#allocation16_spill]] }
 0x1db   : > { %s948_s11 = sand.u32 1, %s1903_s16  }
 0x1dc   : > { %p1905_p0 = scmp.ne.s32.totalorder %s1904_s25, 0  ;;  %s949_s26 = scalar_lea.sflag [#allocation4], %s948_s11 }
 0x1de   : > { %p1226_p2 = pnand %p1906_p11, %p1905_p0 }
 0x1e0   : > { %p1227_p12 = pneg %p1226_p2 }
 0x1e2   : > { %1499 = dma.done.wait (%p1227_p12), %s949_s26, 64  }
 0x1e3   : > { %1501 = vsyncadd (%p1227_p12), %s949_s26, 4294967232  ;;  %s970_s9 = scalar_lea.sflag [#allocation9], %s948_s11 }
 0x1e4   : > { %1503 = dma.done.wait (%p1227_p12), %s970_s9, 128  }
 0x1e5   : > { %1505 = vsyncadd (%p1227_p12), %s970_s9, 4294967168  ;;  %s31_s18 = sadd.s32 1, %s1528_s18   ;;  %s1907_s16 = sld [smem:[#allocation15_spill]] }
 0x1e6   : > { %p28_p3 = scmp.ge.s32.totalorder %s31_s18, 4   ;;  %s1908_s17 = sld [smem:[#allocation17_spill]] }
 0x1e7   : > { %s1909_s13 = smov %s1512_s14  ;;  %s1910_s14 = smov %s1516_s15 }
 0x1e8   : > { %s1911_s15 = smov %s1682_s29  ;;  %30 = sbr.rel (!%p28_p3) target bundleno = 12 (0xc), region = 131 }
 0x1ed   :  { %975 = vsyncpa [#allocation3], 1 }
 0x1ee   :  { %977 = vsyncpa [#allocation3 + $0x1], 1 }
 0x1ef   :  { %978 = vsyncpa [#allocation4], 1 }
 0x1f0   :  { %980 = vsyncpa [#allocation4 + $0x1], 1 }
 0x1f1   :  { %981 = vsyncpa [#allocation9], 1 }
 0x1f2   :  { %983 = vsyncpa [#allocation9 + $0x1], 1 }
 0x1f3   :  { %984 = vsyncpa [#allocation5], 1 }
 0x1f4   :  { %986 = vsyncpa [#allocation5 + $0x1], 1 }

</bundles_post_ra>
